<compile_context>
chip_gen: v7x
topology: tpu7x:2x2x1
jax: 0.10.0
libtpu: 0.0.40
codegen_flags: <defaults>
</compile_context>

<pallas_src>
import jax
import jax.numpy as jnp
from jax.experimental import pallas as pl
from jax.experimental.pallas import tpu as pltpu


def linear_maxmin_kernel(x_ref, w_ref, b_ref, o_ref):
    # Single MXU matmul over the full contraction, accumulated in f32.
    y = jnp.dot(x_ref[...], w_ref[...], preferred_element_type=jnp.float32)

    # Global (whole-tensor) max / min, matching torch.max / torch.min on the
    # full mm result. XLU reductions — a handful of cycles on one vreg.
    mx = jnp.max(y)
    mn = jnp.min(y)

    # True divide: rounds identically to the reference; negligible cost at
    # one vreg (per review, no VLIW slot is near saturation here).
    y = (y - mx) / (mx - mn)

    # b_ref is (1, N); broadcasts over rows like b.expand_as(x).
    o_ref[...] = (y + b_ref[...]).astype(o_ref.dtype)


def linear_maxmin(x, w, b):
    M, K = x.shape
    K2, N = w.shape
    assert K == K2 and b.shape == (N,)

    b2d = b.reshape(1, N)

    itemsize = jnp.dtype(x.dtype).itemsize
    cost = pl.CostEstimate(
        flops=2 * M * K * N,
        transcendentals=0,
        bytes_accessed=(M * K + K * N + N + M * N) * itemsize,
    )

    # No grid: the whole problem is one VMEM-resident block, so the kernel is
    # invoked exactly once with full arrays in VMEM (zero pipeline overhead).
    return pl.pallas_call(
        linear_maxmin_kernel,
        out_shape=jax.ShapeDtypeStruct((M, N), x.dtype),
        in_specs=[
            pl.BlockSpec(memory_space=pltpu.MemorySpace.VMEM),  # x  (M, K)
            pl.BlockSpec(memory_space=pltpu.MemorySpace.VMEM),  # w  (K, N)
            pl.BlockSpec(memory_space=pltpu.MemorySpace.VMEM),  # b  (1, N)
        ],
        out_specs=pl.BlockSpec(memory_space=pltpu.MemorySpace.VMEM),
        cost_estimate=cost,
    )(x, w, b2d)


def reference(x, w, b):
    y = x @ w
    mx = jnp.max(y)
    mn = jnp.min(y)
    y = (y - mx) / (mx - mn)
    return y + b[None, :]


if __name__ == "__main__":
    # Small shapes consistent with the module: batch=8, in_features=256,
    # out_features=128.
    M, K, N = 8, 256, 128

    key = jax.random.PRNGKey(0)
    kx, kw, kb = jax.random.split(key, 3)

    x = jax.random.normal(kx, (M, K), dtype=jnp.float32)
    # Parameters initialized like torch.randn(in_features, out_features) /
    # torch.randn(out_features), but deterministically from PRNGKey(0).
    w = jax.random.normal(kw, (K, N), dtype=jnp.float32)
    b = jax.random.normal(kb, (N,), dtype=jnp.float32)

    out = jax.block_until_ready(linear_maxmin(x, w, b))
    ref = jax.block_until_ready(reference(x, w, b))

    assert out.shape == (M, N)
    assert jnp.allclose(out, ref, atol=1e-5, rtol=1e-5)
    print("KERNEL_OK")
</pallas_src>

<mosaic_0001>
module attributes {stable_mosaic.version = 11 : i64} {
  func.func @linear_maxmin_kernel(%arg0: memref<8x256xf32, #tpu.memory_space<vmem>>, %arg1: memref<256x128xf32, #tpu.memory_space<vmem>>, %arg2: memref<1x128xf32, #tpu.memory_space<vmem>>, %arg3: memref<8x128xf32, #tpu.memory_space<vmem>>) attributes {dimension_semantics = [], scalar_prefetch = 0 : i64, scratch_operands = 0 : i64, tpu.core_type = #tpu.core_type<tc>} {
    %c0 = arith.constant 0 : index
    %c0_0 = arith.constant 0 : index
    %0 = vector.load %arg0[%c0, %c0_0] : memref<8x256xf32, #tpu.memory_space<vmem>>, vector<8x256xf32>
    %c0_1 = arith.constant 0 : index
    %c0_2 = arith.constant 0 : index
    %1 = vector.load %arg1[%c0_1, %c0_2] : memref<256x128xf32, #tpu.memory_space<vmem>>, vector<256x128xf32>
    %cst = arith.constant dense<0.000000e+00> : vector<8x128xf32>
    %2 = tpu.matmul %0, %1, %cst {dimension_numbers = #tpu.dot_dimension_numbers<[1], [0], [0], [1], [0, 0, 1, 1], [], []>} : vector<8x256xf32>, vector<256x128xf32>, vector<8x128xf32> -> vector<8x128xf32>
    %3 = vector.shape_cast %2 : vector<8x128xf32> to vector<1x8x128xf32>
    %cst_3 = arith.constant dense<0xFF800000> : vector<1xf32>
    %4 = vector.multi_reduction <maximumf>, %3, %cst_3 [1, 2] : vector<1x8x128xf32> to vector<1xf32>
    %5 = vector.shape_cast %4 : vector<1xf32> to vector<1x1x1xf32>
    %6 = vector.extract %5[0, 0, 0] : f32 from vector<1x1x1xf32>
    %7 = vector.shape_cast %2 : vector<8x128xf32> to vector<1x8x128xf32>
    %cst_4 = arith.constant dense<0x7F800000> : vector<1xf32>
    %8 = vector.multi_reduction <minimumf>, %7, %cst_4 [1, 2] : vector<1x8x128xf32> to vector<1xf32>
    %9 = vector.shape_cast %8 : vector<1xf32> to vector<1x1x1xf32>
    %10 = vector.extract %9[0, 0, 0] : f32 from vector<1x1x1xf32>
    %11 = vector.broadcast %6 : f32 to vector<8x128xf32>
    %12 = arith.subf %2, %11 : vector<8x128xf32>
    %13 = arith.subf %6, %10 : f32
    %14 = vector.broadcast %13 : f32 to vector<8x128xf32>
    %15 = arith.divf %12, %14 : vector<8x128xf32>
    %c0_5 = arith.constant 0 : index
    %c0_6 = arith.constant 0 : index
    %16 = vector.load %arg2[%c0_5, %c0_6] : memref<1x128xf32, #tpu.memory_space<vmem>>, vector<1x128xf32>
    %17 = vector.broadcast %16 : vector<1x128xf32> to vector<8x128xf32>
    %18 = arith.addf %15, %17 : vector<8x128xf32>
    %c0_7 = arith.constant 0 : index
    %c0_8 = arith.constant 0 : index
    %19 = vector.load %arg3[%c0_7, %c0_8] : memref<8x128xf32, #tpu.memory_space<vmem>>, vector<8x128xf32>
    tpu.vector_store %arg3[%c0_7, %c0_8], %18 {strides = array<i32>} : memref<8x128xf32, #tpu.memory_space<vmem>>, vector<8x128xf32>,
    return
  }
}

</mosaic_0001>

<bundles_post_ra>
// kernel: tpu_custom_call.1
= control target key start
LH: loop header
LB: loop body
LE: loop exit
PB: predicated region body
PF: predicated region fallthrough
CT: control target
= control target key end

     0   :  { %8 = vsyncpa [#allocation3], 0  ;;  %s416_s0 = inlined_call_operand.hbm [shape: f32[8,256], index: 0, kind: input, shape index: {}]   ;;  %s417_s1 = inlined_call_operand.hbm [shape: f32[256,128], index: 1, kind: input, shape index: {}]   ;;  %s418_s2 = inlined_call_operand.vmem [shape: f32[1,128], index: 2, kind: input, shape index: {}]   ;;  %s419_s3 = inlined_call_operand.hbm [shape: f32[8,128], index: 3, kind: output, shape index: {}]  }
   0x1   :  { %9 = vsyncpa [#allocation6], 0 }
   0x2   :  { %10 = vsyncpa [#allocation4], 0  ;;  %s345_s12 = smov [#allocation2]   ;;  %s346_s14 = smov [#allocation5]  }
   0x3   :  { %s17_s13 = sshll.u32 %s345_s12, 4  ;;  %s26_s15 = sshll.u32 %s346_s14, 4  ;;  %s18_s13 = int_to_ptr.vmem [resolvable:$true] %s17_s13  ;;  %s370_s15 = int_to_ptr.vmem [resolvable:$true] %s26_s15 }
   0x4   :  { %s273_s18 = scalar_lea.hbm %s416_s0, 256 }
   0x5   :  { %p274_p0 = scmp.ne.s32.totalorder %s416_s0, %s273_s18  ;;  %p277_p1 = scmp.lt.u32.totalorder %s273_s18, %s416_s0 }
   0x7   :  { %p279_p2 = pnand %p277_p1, %p274_p0 }
   0x9   :  { %282 = shalt.err (!%p279_p2)
}
   0xa   :  { %s283_s23 = scalar_lea.vmem %s18_s13, 256  ;;  %p288_p4 = scmp.lt.s32.totalorder %s18_s13, %s18_s13 }
   0xb   :  { %p284_p3 = scmp.ne.s32.totalorder %s18_s13, %s283_s23  ;;  %p289_p5 = scmp.lt.s32.totalorder %s283_s23, %s283_s23 }
   0xd   :  { %p290_p6 = por %p289_p5, %p288_p4 }
   0xf   :  { %p291_p7 = pnand %p290_p6, %p284_p3 }
  0x11   :  { %294 = shalt.err (!%p291_p7)
}
  0x12   :  { %20 = dma.hbm_to_vmem [thread:$0]  %s416_s0, 256, %s18_s13, [#allocation3]  }
  0x13   :  { %s295_s28 = scalar_lea.hbm %s417_s1, 4096 }
  0x14   :  { %p296_p8 = scmp.ne.s32.totalorder %s417_s1, %s295_s28  ;;  %p299_p9 = scmp.lt.u32.totalorder %s295_s28, %s417_s1 }
  0x16   :  { %p301_p10 = pnand %p299_p9, %p296_p8 }
  0x18   :  { %304 = shalt.err (!%p301_p10)
}
  0x19   :  { %s305_s6 = scalar_lea.vmem %s370_s15, 4096  ;;  %p310_p12 = scmp.lt.s32.totalorder %s370_s15, %s370_s15 }
  0x1a   :  { %p306_p11 = scmp.ne.s32.totalorder %s370_s15, %s305_s6  ;;  %p311_p13 = scmp.lt.s32.totalorder %s305_s6, %s305_s6 }
  0x1c   :  { %p312_p0 = por %p311_p13, %p310_p12 }
  0x1e   :  { %p313_p1 = pnand %p312_p0, %p306_p11 }
  0x20   :  { %316 = shalt.err (!%p313_p1)
}
  0x21   :  { %s347_s0 = smov 128   ;;  %s348_s7 = smov 8  }
  0x22   :  { %32 = dma.hbm_to_vmem [thread:$0]  %s417_s1, 4096, %s370_s15, [#allocation6], %s347_s0, %s347_s0, %s348_s7  }
  0x23   :  { %339 = dma.done.wait [#allocation3], 256  }
  0x24   :  { %340 = vsyncadd [#allocation3], 4294967040 }
  0x25   :  { %341 = dma.done.wait [#allocation6], 4096  }
  0x26   :  { %342 = vsyncadd [#allocation6], 4294963200  ;;  %v59_v0 = vld [vmem:[#allocation5 + $0x80] sm:$0xff]  ;;  %v60_v1 = vld [vmem:[#allocation5 + $0x88] sm:$0xff]  ;;  %s349_s14 = smov [#allocation7]  }
  0x27   :  { %v43_v2 = vld [vmem:[#allocation5] sm:$0xff]  ;;  %v230_v3 = vpack.c.bf16 %v60_v1, %v59_v0  ;;  %v44_v4 = vld [vmem:[#allocation5 + $0x8] sm:$0xff]  ;;  %v61_v5 = vld [vmem:[#allocation5 + $0x90] sm:$0xff]  ;;  %s184_s15 = sshll.u32 %s349_s14, 4  ;;  %s185_s15 = int_to_ptr.vmem [resolvable:$true] %s184_s15 }
  0x28   :  { %v62_v6 = vld [vmem:[#allocation5 + $0x98] sm:$0xff]  ;;  %v232_v7 = vpack.c.bf16 %v44_v4, %v43_v2  ;;  %v45_v9 = vld [vmem:[#allocation5 + $0x10] sm:$0xff]  ;;  %v63_v11 = vld [vmem:[#allocation5 + $0xa0] sm:$0xff]  ;;  %s317_s16 = scalar_lea.vmem %s185_s15, 128  ;;  %p322_p3 = scmp.lt.s32.totalorder %s185_s15, %s185_s15 }
  0x29   :  { %v234_v8 = vpack.c.bf16 %v62_v6, %v61_v5  ;;  %v46_v10 = vld [vmem:[#allocation5 + $0x18] sm:$0xff]  ;;  %231 = vmatprep.subr.bf16.mxu0 %v230_v3  ;;  %v64_v12 = vld [vmem:[#allocation5 + $0xa8] sm:$0xff]  ;;  %v47_v15 = vld [vmem:[#allocation5 + $0x20] sm:$0xff]  ;;  %p318_p2 = scmp.ne.s32.totalorder %s185_s15, %s317_s16  ;;  %p323_p4 = scmp.lt.s32.totalorder %s317_s16, %s317_s16 }
  0x2a   :  { %233 = vmatpush3.bf16.msra.mxu0 %v232_v7  ;;  %v236_v13 = vpack.c.bf16 %v46_v10, %v45_v9  ;;  %v238_v14 = vpack.c.bf16 %v64_v12, %v63_v11  ;;  %v48_v16 = vld [vmem:[#allocation5 + $0x28] sm:$0xff]  ;;  %v65_v17 = vld [vmem:[#allocation5 + $0xb0] sm:$0xff]  ;;  %v66_v18 = vld [vmem:[#allocation5 + $0xb8] sm:$0xff] }
  0x2b   :  { %235 = vmatprep.subr.bf16.mxu0 %v234_v8  ;;  %v240_v19 = vpack.c.bf16 %v48_v16, %v47_v15  ;;  %v242_v20 = vpack.c.bf16 %v66_v18, %v65_v17  ;;  %v49_v21 = vld [vmem:[#allocation5 + $0x30] sm:$0xff]  ;;  %v50_v22 = vld [vmem:[#allocation5 + $0x38] sm:$0xff]  ;;  %v67_v23 = vld [vmem:[#allocation5 + $0xc0] sm:$0xff]  ;;  %p324_p5 = por %p323_p4, %p322_p3 }
  0x2c   :  { %v68_v24 = vld [vmem:[#allocation5 + $0xc8] sm:$0xff]  ;;  %v42_v25 = vld [vmem:[#allocation2 + $0x8] sm:$0xff]  ;;  %v244_v26 = vpack.c.bf16 %v50_v22, %v49_v21  ;;  %v51_v28 = vld [vmem:[#allocation5 + $0x40] sm:$0xff] }
  0x2d   :  { %139 = vmatprep.mubr.f32.mxu0 %v42_v25  ;;  %v246_v27 = vpack.c.bf16 %v68_v24, %v67_v23  ;;  %v52_v29 = vld [vmem:[#allocation5 + $0x48] sm:$0xff]  ;;  %v69_v30 = vld [vmem:[#allocation5 + $0xd0] sm:$0xff]  ;;  %v70_v31 = vld [vmem:[#allocation5 + $0xd8] sm:$0xff]  ;;  %p325_p6 = pnand %p324_p5, %p318_p2 }
  0x2e   :  { %237 = vmatpush3.bf16.msra.mxu0 %v236_v13  ;;  %v248_v32 = vpack.c.bf16 %v52_v29, %v51_v28  ;;  %v250_v33 = vpack.c.bf16 %v70_v31, %v69_v30  ;;  %v53_v34 = vld [vmem:[#allocation5 + $0x50] sm:$0xff]  ;;  %v54_v35 = vld [vmem:[#allocation5 + $0x58] sm:$0xff]  ;;  %v71_v36 = vld [vmem:[#allocation5 + $0xe0] sm:$0xff] }
  0x2f   :  { %239 = vmatprep.subr.bf16.mxu0 %v238_v14  ;;  %v72_v37 = vld [vmem:[#allocation5 + $0xe8] sm:$0xff]  ;;  %v252_v38 = vpack.c.bf16 %v54_v35, %v53_v34  ;;  %v55_v40 = vld [vmem:[#allocation5 + $0x60] sm:$0xff]  ;;  %v73_v42 = vld [vmem:[#allocation5 + $0xf0] sm:$0xff] }
  0x30   :  { %v254_v39 = vpack.c.bf16 %v72_v37, %v71_v36  ;;  %v56_v41 = vld [vmem:[#allocation5 + $0x68] sm:$0xff]  ;;  %v74_v43 = vld [vmem:[#allocation5 + $0xf8] sm:$0xff]  ;;  %v57_v46 = vld [vmem:[#allocation5 + $0x70] sm:$0xff] }
  0x31   :  { %v256_v44 = vpack.c.bf16 %v56_v41, %v55_v40  ;;  %v258_v45 = vpack.c.bf16 %v74_v43, %v73_v42  ;;  %v58_v47 = vld [vmem:[#allocation5 + $0x78] sm:$0xff]  ;;  %v41_v49 = vld [vmem:[#allocation2] sm:$0xff] }
  0x32   :  { %241 = vmatpush3.bf16.msra.mxu0 %v240_v19  ;;  %v260_v48 = vpack.c.bf16 %v58_v47, %v57_v46  ;;  %v194_v7 = vld [vmem:[%s418_s2] ss:$0 sm:$0xff] }
  0x33   :  { %243 = vmatprep.subr.bf16.mxu0 %v242_v20 }
  0x36   :  { %245 = vmatpush3.bf16.msra.mxu0 %v244_v26 }
  0x37   :  { %247 = vmatprep.subr.bf16.mxu0 %v246_v27 }
  0x3a   :  { %249 = vmatpush3.bf16.msra.mxu0 %v248_v32 }
  0x3b   :  { %251 = vmatprep.subr.bf16.mxu0 %v250_v33 }
  0x3e   :  { %253 = vmatpush3.bf16.msra.mxu0 %v252_v38 }
  0x3f   :  { %255 = vmatprep.subr.bf16.mxu0 %v254_v39 }
  0x42   :  { %257 = vmatpush3.bf16.msra.mxu0 %v256_v44 }
  0x43   :  { %259 = vmatprep.subr.bf16.mxu0 %v258_v45 }
  0x46   :  { %261 = vmatpush3.bf16.msra.mxu0 %v260_v48 }
  0x49   :  { %140 = vmatmul.mubr.f32.vlgmr.msra.gmra.mrb[0].mxu0 %v41_v49 }
 0x11c   :  { %v227_v50 = vpop.f32.mrb[0].mxu0 }
 0x11d   :  { %v228_v51 = vpop.f32.mrb[1].mxu0 }
 0x11e   :  { %v229_v52 = vadd.f32 %v228_v51, %v227_v50 }
 0x120   :  { %145 = vmax.xlane.f32.xlu0 %v229_v52 }
 0x124   :  { %154 = vmin.xlane.f32.xlu0 %v229_v52 }
 0x1ad   :  { %v146_v53 = vpop.xlane.xlu0 %145 }
 0x1ae   :  { %v147_v54 = vrot.slane %v146_v53, 4 }
 0x1b0   :  { %v148_v55 = vmax.f32 %v146_v53, %v147_v54 }
 0x1b1   :  { %v155_v56 = vpop.xlane.xlu0 %154 }
 0x1b2   :  { %v149_v57 = vrot.slane %v148_v55, 2  ;;  %v156_v58 = vrot.slane %v155_v56, 4 }
 0x1b4   :  { %v157_v59 = vmin.f32 %v155_v56, %v156_v58  ;;  %v150_v60 = vmax.f32 %v148_v55, %v149_v57 }
 0x1b6   :  { %v158_v61 = vrot.slane %v157_v59, 2  ;;  %v151_v62 = vrot.slane %v150_v60, 1 }
 0x1b8   :  { %v159_v63 = vmin.f32 %v157_v59, %v158_v61  ;;  %v152_v0 = vmax.f32 %v150_v60, %v151_v62 }
 0x1ba   :  { %262 = vpush %v152_v0  ;;  %v160_v1 = vrot.slane %v159_v63, 1 }
 0x1bc   :  { %v161_v2 = vmin.f32 %v159_v63, %v160_v1 }
 0x1be   :  { %264 = vpush %v161_v2 }
 0x1eb   :  { %s263_s1 = spop %262 }
 0x1ec   :  { %v163_v4 = vstv %s263_s1 }
 0x1ed   :  { %v164_v5 = vsub.f32 %v229_v52, %v163_v4 }
 0x1ef   :  { %s265_s10 = spop %264 }
 0x1f0   :  { %s165_s11 = ssub.f32 %s263_s1, %s265_s10 }
 0x1f2   :  { %v166_v3 = vstv %s165_s11 }
 0x1f3   :  { %271 = vrcp.f32 %v166_v3 }
 0x1fd   :  { %v272_v6 = vpop.eup %271 }
 0x1fe   :  { %v168_v8 = vmul.f32 %v272_v6, %v164_v5 }
 0x200   :  { %v176_v9 = vadd.f32 %v194_v7, %v168_v8 }
 0x202   :  { %177 = vst [vmem:[#allocation7] sm:$0xff] %v176_v9 }
 0x203   :  { %328 = shalt.err (!%p325_p6)
}
 0x204   :  { %s329_s19 = scalar_lea.hbm %s419_s3, 128 }
 0x205   :  { %p330_p7 = scmp.ne.s32.totalorder %s419_s3, %s329_s19  ;;  %p333_p8 = scmp.lt.u32.totalorder %s329_s19, %s419_s3 }
 0x207   :  { %p335_p9 = pnand %p333_p8, %p330_p7 }
 0x209   :  { %338 = shalt.err (!%p335_p9)
}
 0x20a   :  { %187 = dma.vmem_to_hbm [thread:$0]  %s185_s15, 128, %s419_s3, [#allocation4]  }
 0x20b   :  { %343 = dma.done.wait [#allocation4], 128  }
 0x20c   :  { %344 = vsyncadd [#allocation4], 4294967168 }
 0x20d   :  { %191 = vsyncpa [#allocation3], 1 }
 0x20e   :  { %192 = vsyncpa [#allocation6], 1 }
 0x20f   :  { %193 = vsyncpa [#allocation4], 1 }

</bundles_post_ra>
